<compile_context>
chip_gen: v5e
topology: v5e:2x2
jax: 0.10.0
libtpu: 0.0.40
codegen_flags: <defaults>
</compile_context>

<pallas_src>
import functools
import math

import jax
import jax.numpy as jnp
from jax.experimental import pallas as pl
from jax.experimental.pallas import tpu as pltpu


def _round_up(x, m):
    return (x + m - 1) // m * m


def _pad2(arr, rows, cols, dtype):
    """Zero-pad a 2-D array to (rows, cols) and cast; skip pad if already sized."""
    r, c = arr.shape
    if (r, c) == (rows, cols):
        return arr.astype(dtype)
    return jnp.zeros((rows, cols), dtype).at[:r, :c].set(arr.astype(dtype))


def _pad_row(vec, cols, dtype):
    """(n,) vector -> lane-dense (1, cols) row, zero-padded, cast."""
    n = vec.shape[0]
    v = vec.astype(dtype).reshape(1, n)
    if n == cols:
        return v
    return jnp.zeros((1, cols), dtype).at[:, :n].set(v)


def _vmem_limit():
    """~75% of physical VMEM (48 MiB on v7x, 96 MiB on v5e/v6e); safe fallback."""
    try:
        return int(pltpu.get_tpu_info().vmem_capacity_bytes * 3 // 4)
    except Exception:
        return 48 * 1024 * 1024


# ------------------- pass A: hoisted per-node dense projections ---------------
def _proj1_kernel(x_ref, w_l_ref, w_r_ref, b_ref, p1_ref, r1_ref):
    # x_ref:(TM,Fp) bf16, weights bf16, b f32 -> P1 bf16 (MXU operand), R1 f32.
    x = x_ref[...]
    p1 = jnp.dot(x, w_l_ref[...], preferred_element_type=jnp.float32)
    r1 = jnp.dot(x, w_r_ref[...], preferred_element_type=jnp.float32) + b_ref[...]
    p1_ref[...] = p1.astype(jnp.bfloat16)
    r1_ref[...] = r1


# ------- pass B: layer-1 aggregation + layer-2 projections in the epilogue ----
def _agg1_kernel(a_ref, p1_ref, r1_ref, w2l_ref, w2r_ref, b2_ref, wlin1_ref,
                 g1_ref, r2_ref, head1_ref, acc_ref):
    k = pl.program_id(1)

    @pl.when(k == 0)
    def _():
        acc_ref[...] = jnp.zeros_like(acc_ref)

    # mean-aggregation partial sum: (TM, TN) bf16 x (TN, Hp) bf16 -> f32 acc
    acc_ref[...] += jnp.dot(a_ref[...], p1_ref[...],
                            preferred_element_type=jnp.float32)

    @pl.when(k == pl.num_programs(1) - 1)
    def _():
        h1 = jnp.maximum(acc_ref[...] + r1_ref[...], 0.0)      # (TM, Hp) f32
        # dropout: identity (eval mode)
        h1b = h1.astype(jnp.bfloat16)
        g1_ref[...] = jnp.dot(h1b, w2l_ref[...],
                              preferred_element_type=jnp.float32).astype(jnp.bfloat16)
        r2_ref[...] = (jnp.dot(h1b, w2r_ref[...],
                               preferred_element_type=jnp.float32) + b2_ref[...])
        # JK-cat head partial: h1 . wlin1  (lane-dense (1, TM) store)
        head1_ref[...] = jnp.sum(h1 * wlin1_ref[...], axis=-1)[None, :]


# ------ pass C: layer-2 aggregation + JK-cat head + sigmoid + uncertainty -----
def _agg2_head_kernel(a_ref, g1_ref, r2_ref, head1_ref, wlin2_ref, s1_ref,
                      out_ref, acc_ref, *, unc_low, unc_high):
    k = pl.program_id(1)

    @pl.when(k == 0)
    def _():
        acc_ref[...] = jnp.zeros_like(acc_ref)

    acc_ref[...] += jnp.dot(a_ref[...], g1_ref[...],
                            preferred_element_type=jnp.float32)

    @pl.when(k == pl.num_programs(1) - 1)
    def _():
        h2 = jnp.maximum(acc_ref[...] + r2_ref[...], 0.0)       # (TM, Hp) f32
        # head1 already contains h1.wlin1 + b_lin
        logits = jnp.sum(h2 * wlin2_ref[...], axis=-1)[None, :] + head1_ref[...]
        preds = jax.nn.sigmoid(logits)                           # (1, TM)
        s1 = s1_ref[...]
        mask = (s1 >= unc_low) & (s1 <= unc_high)
        out_ref[...] = jnp.where(mask, preds, s1)


# --------------------------------- wrapper ------------------------------------
def uncertainty_masked_graphsage(a_mean, x, params, stage1_scores,
                                 unc_low=0.4, unc_high=0.6, tm=256, tn=512):
    """Fused forward pass. Returns final scores of shape (N,)."""
    n, f = x.shape
    h = params["w1_l"].shape[1]

    tile = (tm * tn) // math.gcd(tm, tn)      # N padded so both tiles divide it
    npad = _round_up(n, tile)
    fp = _round_up(f, 128)
    hp = _round_up(h, 128)
    nr, nc = npad // tm, npad // tn

    f32, bf16 = jnp.float32, jnp.bfloat16

    # bf16 operands for every MXU dot; padding is exact (padded rows/cols zero).
    a_p = _pad2(a_mean, npad, npad, bf16)
    x_p = _pad2(x, npad, fp, bf16)
    w1l = _pad2(params["w1_l"], fp, hp, bf16)
    w1r = _pad2(params["w1_r"], fp, hp, bf16)
    b1 = _pad2(params["b1_l"], 1, hp, f32)
    w2l = _pad2(params["w2_l"], hp, hp, bf16)
    w2r = _pad2(params["w2_r"], hp, hp, bf16)
    b2 = _pad2(params["b2_l"], 1, hp, f32)
    # pre-split JK-cat head weight -> no in-kernel concatenate
    wlin1 = _pad2(params["w_lin"][:h, 0][None, :], 1, hp, f32)
    wlin2 = _pad2(params["w_lin"][h:, 0][None, :], 1, hp, f32)
    b_lin = jnp.asarray(params["b_lin"], f32).reshape(())
    s1_p = _pad_row(stage1_scores, npad, f32)

    vmem_limit = _vmem_limit()
    cparams1 = pltpu.CompilerParams(dimension_semantics=("parallel",),
                                    vmem_limit_bytes=vmem_limit)
    cparams2 = pltpu.CompilerParams(dimension_semantics=("parallel", "arbitrary"),
                                    vmem_limit_bytes=vmem_limit)
    VMEM = pltpu.MemorySpace.VMEM

    # ----- pass A: dense projections (hoisted out of the aggregation loops) ---
    p1, r1 = pl.pallas_call(
        _proj1_kernel,
        out_shape=(jax.ShapeDtypeStruct((npad, hp), bf16),
                   jax.ShapeDtypeStruct((npad, hp), f32)),
        grid_spec=pltpu.PrefetchScalarGridSpec(
            num_scalar_prefetch=0, grid=(nr,),
            in_specs=[
                pl.BlockSpec((tm, fp), lambda i: (i, 0), memory_space=VMEM),
                pl.BlockSpec((fp, hp), lambda i: (0, 0), memory_space=VMEM),
                pl.BlockSpec((fp, hp), lambda i: (0, 0), memory_space=VMEM),
                pl.BlockSpec((1, hp), lambda i: (0, 0), memory_space=VMEM),
            ],
            out_specs=(
                pl.BlockSpec((tm, hp), lambda i: (i, 0), memory_space=VMEM),
                pl.BlockSpec((tm, hp), lambda i: (i, 0), memory_space=VMEM),
            ),
        ),
        compiler_params=cparams1,
        cost_estimate=pl.CostEstimate(
            flops=4 * npad * fp * hp, transcendentals=0,
            bytes_accessed=2 * npad * fp + 4 * fp * hp + 6 * npad * hp),
    )(x_p, w1l, w1r, b1)

    # ----- pass B: layer-1 aggregation + layer-2 projections + head partial ---
    g1, r2, head1 = pl.pallas_call(
        _agg1_kernel,
        out_shape=(jax.ShapeDtypeStruct((npad, hp), bf16),
                   jax.ShapeDtypeStruct((npad, hp), f32),
                   jax.ShapeDtypeStruct((1, npad), f32)),
        grid_spec=pltpu.PrefetchScalarGridSpec(
            num_scalar_prefetch=0, grid=(nr, nc),
            in_specs=[
                pl.BlockSpec((tm, tn), lambda i, k: (i, k), memory_space=VMEM),
                pl.BlockSpec((tn, hp), lambda i, k: (k, 0), memory_space=VMEM),
                pl.BlockSpec((tm, hp), lambda i, k: (i, 0), memory_space=VMEM),
                pl.BlockSpec((hp, hp), lambda i, k: (0, 0), memory_space=VMEM),
                pl.BlockSpec((hp, hp), lambda i, k: (0, 0), memory_space=VMEM),
                pl.BlockSpec((1, hp), lambda i, k: (0, 0), memory_space=VMEM),
                pl.BlockSpec((1, hp), lambda i, k: (0, 0), memory_space=VMEM),
            ],
            out_specs=(
                pl.BlockSpec((tm, hp), lambda i, k: (i, 0), memory_space=VMEM),
                pl.BlockSpec((tm, hp), lambda i, k: (i, 0), memory_space=VMEM),
                pl.BlockSpec((1, tm), lambda i, k: (0, i), memory_space=VMEM),
            ),
            scratch_shapes=[pltpu.VMEM((tm, hp), f32)],
        ),
        compiler_params=cparams2,
        cost_estimate=pl.CostEstimate(
            flops=2 * npad * npad * hp + 4 * npad * hp * hp,
            transcendentals=0,
            bytes_accessed=2 * npad * npad + (nr + 5) * npad * hp * 2),
    )(a_p, p1, r1, w2l, w2r, b2, wlin1)

    head1 = head1 + b_lin   # fold the scalar head bias in (tiny O(N) XLA add)

    # ----- pass C: layer-2 aggregation + head + sigmoid + uncertainty mask ----
    kernel_c = functools.partial(_agg2_head_kernel,
                                 unc_low=unc_low, unc_high=unc_high)
    out2d = pl.pallas_call(
        kernel_c,
        out_shape=jax.ShapeDtypeStruct((1, npad), f32),
        grid_spec=pltpu.PrefetchScalarGridSpec(
            num_scalar_prefetch=0, grid=(nr, nc),
            in_specs=[
                pl.BlockSpec((tm, tn), lambda i, k: (i, k), memory_space=VMEM),
                pl.BlockSpec((tn, hp), lambda i, k: (k, 0), memory_space=VMEM),
                pl.BlockSpec((tm, hp), lambda i, k: (i, 0), memory_space=VMEM),
                pl.BlockSpec((1, tm), lambda i, k: (0, i), memory_space=VMEM),
                pl.BlockSpec((1, hp), lambda i, k: (0, 0), memory_space=VMEM),
                pl.BlockSpec((1, tm), lambda i, k: (0, i), memory_space=VMEM),
            ],
            out_specs=pl.BlockSpec((1, tm), lambda i, k: (0, i),
                                   memory_space=VMEM),
            scratch_shapes=[pltpu.VMEM((tm, hp), f32)],
        ),
        compiler_params=cparams2,
        cost_estimate=pl.CostEstimate(
            flops=2 * npad * npad * hp + 2 * npad * hp,
            transcendentals=npad,
            bytes_accessed=2 * npad * npad + (nr + 2) * npad * hp * 2),
    )(a_p, g1, r2, head1, wlin2, s1_p)

    return out2d[0, :n]


# ------------------------------ glue (plain JAX) ------------------------------
# TODO(synk): for large sparse graphs, replace the dense O(N^2) mean adjacency
# with a scalar-prefetched CSR neighbor gather (PrefetchScalarGridSpec row
# pointers in SMEM + make_async_copy gathers) so HBM traffic scales with E.
def build_mean_adjacency(edge_index, num_nodes):
    """Dense mean-aggregation matrix A[i, j] = 1/in_deg(i) for edge j -> i."""
    src, dst = edge_index[0], edge_index[1]
    adj = jnp.zeros((num_nodes, num_nodes), jnp.float32).at[dst, src].add(1.0)
    deg = jnp.sum(adj, axis=1, keepdims=True)
    return adj / jnp.maximum(deg, 1.0)


def init_params(key, in_channels, hidden_channels):
    keys = jax.random.split(key, 8)
    scale = 0.1
    H, F_ = hidden_channels, in_channels
    return {
        "w1_l": scale * jax.random.normal(keys[0], (F_, H), jnp.float32),
        "b1_l": scale * jax.random.normal(keys[1], (1, H), jnp.float32),
        "w1_r": scale * jax.random.normal(keys[2], (F_, H), jnp.float32),
        "w2_l": scale * jax.random.normal(keys[3], (H, H), jnp.float32),
        "b2_l": scale * jax.random.normal(keys[4], (1, H), jnp.float32),
        "w2_r": scale * jax.random.normal(keys[5], (H, H), jnp.float32),
        "w_lin": scale * jax.random.normal(keys[6], (2 * H, 1), jnp.float32),
        "b_lin": scale * jax.random.normal(keys[7], (1, 1), jnp.float32),
    }


def reference_forward(a_mean, x, p, s1, low=0.4, high=0.6):
    """Pure-JAX f32 reference (same math) for correctness check."""
    h1 = jnp.maximum(a_mean @ x @ p["w1_l"] + p["b1_l"] + x @ p["w1_r"], 0.0)
    h2 = jnp.maximum(a_mean @ h1 @ p["w2_l"] + p["b2_l"] + h1 @ p["w2_r"], 0.0)
    jk = jnp.concatenate([h1, h2], axis=-1)
    preds = jax.nn.sigmoid(jk @ p["w_lin"] + p["b_lin"]).reshape(-1)
    mask = (s1 >= low) & (s1 <= high)
    return jnp.where(mask, preds, s1)


# ----------------------------------- main --------------------------------------
if __name__ == "__main__":
    N = 512            # node count (tile-aligned so the adjacency pad is skipped)
    E = 2048
    IN_CHANNELS = 16
    HIDDEN = 64

    key = jax.random.PRNGKey(0)
    k_x, k_src, k_dst, k_s1, k_par = jax.random.split(key, 5)

    x = jax.random.normal(k_x, (N, IN_CHANNELS), jnp.float32)
    edge_index = jnp.stack([
        jax.random.randint(k_src, (E,), 0, N),
        jax.random.randint(k_dst, (E,), 0, N),
    ], axis=0)
    stage1_scores = jax.random.uniform(k_s1, (N,), jnp.float32)

    params = init_params(k_par, IN_CHANNELS, HIDDEN)
    a_mean = build_mean_adjacency(edge_index, N)

    out = uncertainty_masked_graphsage(a_mean, x, params, stage1_scores)
    out = jax.block_until_ready(out)

    ref = reference_forward(a_mean, x, params, stage1_scores)
    assert out.shape == (N,)
    # bf16 MXU operands -> relaxed tolerance vs the f32 reference.
    assert jnp.allclose(out, ref, atol=2e-2), (
        f"mismatch vs reference, max err {jnp.max(jnp.abs(out - ref))}")

    print("KERNEL_OK")
</pallas_src>

<mosaic_0001>
module attributes {stable_mosaic.version = 11 : i64} {
  func.func @_proj1_kernel(%arg0: i32, %arg1: memref<256x128xbf16, #tpu.memory_space<vmem>>, %arg2: memref<128x128xbf16, #tpu.memory_space<vmem>>, %arg3: memref<128x128xbf16, #tpu.memory_space<vmem>>, %arg4: memref<1x128xf32, #tpu.memory_space<vmem>>, %arg5: memref<256x128xbf16, #tpu.memory_space<vmem>>, %arg6: memref<256x128xf32, #tpu.memory_space<vmem>>) attributes {dimension_semantics = [#tpu.dimension_semantics<parallel>], iteration_bounds = array<i64: 2>, scalar_prefetch = 0 : i64, scratch_operands = 0 : i64, tpu.core_type = #tpu.core_type<tc>, window_params = [{transform_indices = @transform_0, window_bounds = array<i64: 256, 128>}, {pipeline_mode = #tpu.pipeline_mode<synchronous>, transform_indices = @transform_1, window_bounds = array<i64: 128, 128>}, {pipeline_mode = #tpu.pipeline_mode<synchronous>, transform_indices = @transform_2, window_bounds = array<i64: 128, 128>}, {pipeline_mode = #tpu.pipeline_mode<synchronous>, transform_indices = @transform_3, window_bounds = array<i64: 1, 128>}, {transform_indices = @transform_4, window_bounds = array<i64: 256, 128>}, {transform_indices = @transform_5, window_bounds = array<i64: 256, 128>}]} {
    %c0 = arith.constant 0 : index
    %c0_0 = arith.constant 0 : index
    %0 = vector.load %arg1[%c0, %c0_0] : memref<256x128xbf16, #tpu.memory_space<vmem>>, vector<256x128xbf16>
    %c0_1 = arith.constant 0 : index
    %c0_2 = arith.constant 0 : index
    %1 = vector.load %arg2[%c0_1, %c0_2] : memref<128x128xbf16, #tpu.memory_space<vmem>>, vector<128x128xbf16>
    %cst = arith.constant dense<0.000000e+00> : vector<256x128xf32>
    %2 = tpu.matmul %0, %1, %cst {dimension_numbers = #tpu.dot_dimension_numbers<[1], [0], [0], [1], [0, 0, 1, 1], [], []>} : vector<256x128xbf16>, vector<128x128xbf16>, vector<256x128xf32> -> vector<256x128xf32>
    %c0_3 = arith.constant 0 : index
    %c0_4 = arith.constant 0 : index
    %3 = vector.load %arg3[%c0_3, %c0_4] : memref<128x128xbf16, #tpu.memory_space<vmem>>, vector<128x128xbf16>
    %cst_5 = arith.constant dense<0.000000e+00> : vector<256x128xf32>
    %4 = tpu.matmul %0, %3, %cst_5 {dimension_numbers = #tpu.dot_dimension_numbers<[1], [0], [0], [1], [0, 0, 1, 1], [], []>} : vector<256x128xbf16>, vector<128x128xbf16>, vector<256x128xf32> -> vector<256x128xf32>
    %c0_6 = arith.constant 0 : index
    %c0_7 = arith.constant 0 : index
    %5 = vector.load %arg4[%c0_6, %c0_7] : memref<1x128xf32, #tpu.memory_space<vmem>>, vector<1x128xf32>
    %6 = vector.broadcast %5 : vector<1x128xf32> to vector<256x128xf32>
    %7 = arith.addf %4, %6 : vector<256x128xf32>
    %8 = arith.truncf %2 : vector<256x128xf32> to vector<256x128xbf16>
    %c0_8 = arith.constant 0 : index
    %c0_9 = arith.constant 0 : index
    %9 = vector.load %arg5[%c0_8, %c0_9] : memref<256x128xbf16, #tpu.memory_space<vmem>>, vector<256x128xbf16>
    tpu.vector_store %arg5[%c0_8, %c0_9], %8 {strides = array<i32>} : memref<256x128xbf16, #tpu.memory_space<vmem>>, vector<256x128xbf16>,
    %c0_10 = arith.constant 0 : index
    %c0_11 = arith.constant 0 : index
    %10 = vector.load %arg6[%c0_10, %c0_11] : memref<256x128xf32, #tpu.memory_space<vmem>>, vector<256x128xf32>
    tpu.vector_store %arg6[%c0_10, %c0_11], %7 {strides = array<i32>} : memref<256x128xf32, #tpu.memory_space<vmem>>, vector<256x128xf32>,
    return
  }
  func.func @transform_0(%arg0: i32) -> (i32, i32) {
    %c0_i32 = arith.constant 0 : i32
    %c0_i32_0 = arith.constant 0 : i32
    return %arg0, %c0_i32 : i32, i32
  }
  func.func @transform_1(%arg0: i32) -> (i32, i32) {
    %c0_i32 = arith.constant 0 : i32
    %c0_i32_0 = arith.constant 0 : i32
    %c0_i32_1 = arith.constant 0 : i32
    return %c0_i32, %c0_i32_0 : i32, i32
  }
  func.func @transform_2(%arg0: i32) -> (i32, i32) {
    %c0_i32 = arith.constant 0 : i32
    %c0_i32_0 = arith.constant 0 : i32
    %c0_i32_1 = arith.constant 0 : i32
    return %c0_i32, %c0_i32_0 : i32, i32
  }
  func.func @transform_3(%arg0: i32) -> (i32, i32) {
    %c0_i32 = arith.constant 0 : i32
    %c0_i32_0 = arith.constant 0 : i32
    %c0_i32_1 = arith.constant 0 : i32
    return %c0_i32, %c0_i32_0 : i32, i32
  }
  func.func @transform_4(%arg0: i32) -> (i32, i32) {
    %c0_i32 = arith.constant 0 : i32
    %c0_i32_0 = arith.constant 0 : i32
    return %arg0, %c0_i32 : i32, i32
  }
  func.func @transform_5(%arg0: i32) -> (i32, i32) {
    %c0_i32 = arith.constant 0 : i32
    %c0_i32_0 = arith.constant 0 : i32
    return %arg0, %c0_i32 : i32, i32
  }
}

</mosaic_0001>

<bundles_post_ra>
// kernel: tpu_custom_call.1
= control target key start
LH: loop header
LB: loop body
LE: loop exit
PB: predicated region body
PF: predicated region fallthrough
CT: control target
= control target key end

     0   :  { %11 = vsyncpa [#allocation3], 0  ;;  %s1885_s0 = inlined_call_operand.hbm [shape: bf16[512,128], index: 0, kind: input, shape index: {}]   ;;  %s1886_s1 = inlined_call_operand.hbm [shape: bf16[128,128], index: 1, kind: input, shape index: {}]   ;;  %s1887_s2 = inlined_call_operand.hbm [shape: bf16[128,128], index: 2, kind: input, shape index: {}]   ;;  %s1888_s3 = inlined_call_operand.vmem [shape: f32[1,128], index: 3, kind: input, shape index: {}]   ;;  %s1889_s4 = inlined_call_operand.hbm [shape: bf16[512,128], index: 4, kind: output, shape index: {0}]   ;;  %s1890_s5 = inlined_call_operand.hbm [shape: f32[512,128], index: 5, kind: output, shape index: {1}]  }
   0x1   :  { %13 = vsyncpa [#allocation3 + $0x1], 0 }
   0x2   :  { %14 = vsyncpa [#allocation6], 0 }
   0x3   :  { %15 = vsyncpa [#allocation4], 0 }
   0x4   :  { %17 = vsyncpa [#allocation4 + $0x1], 0 }
   0x5   :  { %18 = vsyncpa [#allocation10], 0 }
   0x6   :  { %20 = vsyncpa [#allocation10 + $0x1], 0  ;;  %s1596_s18 = smov 0   ;;  %s1598_s19 = smov 0  }
   0x7   :  { %s1600_s20 = smov 0   ;;  %s1602_s21 = smov 0  }
   0x8 LB: > { %s1617_s22 = sadd.s32 4294967295, %s1556_s21   ;;  %s989_s23 = sadd.s32 4294967294, %s1556_s21   ;;  %s1556_s21 = sphi %s1602_s21, %s1902_s21   ;;  %s1552_s20 = sphi %s1600_s20, %s1901_s20   ;;  %s1548_s19 = sphi %s1598_s19, %s1900_s19   ;;  %s1544_s18 = sphi %s1596_s18, %s1899_s18  }
   0x9   : > { %p46_p0 = scmp.ne.s32.totalorder %s1548_s19, %s1544_s18  ;;  %p47_p1 = scmp.eq.s32.totalorder %s1617_s22, 0 }
   0xa   : > { %p133_p2 = scmp.eq.s32.totalorder %s1617_s22, 1  ;;  %p139_p3 = scmp.eq.s32.totalorder %s989_s23, 1 }
   0xb   : > { %p1626_p4 = por %p47_p1, %p46_p0  ;;  %p990_p5 = scmp.ge.s32.totalorder %s1556_s21, 1 }
   0xc   : > { %p1631_p6 = por %p139_p3, %p46_p0  ;;  %p172_p7 = scmp.lt.s32.totalorder %s1556_s21, 3 }
   0xd   : > { %s183_s28 = sshll.u32 %s1886_s1, 4  ;;  %s1558_s30 = smov [#allocation5]   ;;  %s184_s28 = int_to_ptr.hbm [resolvable:$true] %s183_s28 }
   0xe   : > { %p1639_p8 = pnand %p990_p5, %p172_p7  ;;  %s185_s6 = sshll.u32 %s1558_s30, 4  ;;  %s186_s6 = int_to_ptr.vmem [resolvable:$true] %s185_s6 }
   0xf   : > { %s197_s9 = sshll.u32 %s1887_s2, 4  ;;  %s1891_s10 = smov 64   ;;  %s198_s9 = int_to_ptr.hbm [resolvable:$true] %s197_s9 }
  0x10   : > { %p1299_p9 = pneg %p1639_p8  ;;  %s1560_s11 = smov 4  }
  0x11   : > { %s1561_s12 = smov [#allocation7]   ;;  %s1658_s14 = sadd.s32 1, %s1556_s21  }
  0x12   : > { %p1300_p10 = pnand %p1299_p9, %p47_p1  ;;  %s199_s13 = sshll.u32 %s1561_s12, 4  ;;  %s200_s13 = int_to_ptr.vmem [resolvable:$true] %s199_s13 }
  0x13   : > { %s33_s15 = sadd.s32 1, %s1552_s20  ;;  %s30_s16 = ssub.s32 %s1556_s21, %s1658_s14 }
  0x14   : > { %1302 = dma.hbm_to_vmem [thread:$0]  (!%p1300_p10), %s184_s28, 1024, %s186_s6, [#allocation6], %s1891_s10, %s1891_s10, %s1560_s11  }
  0x15   : > { %1305 = dma.hbm_to_vmem [thread:$0]  (!%p1300_p10), %s198_s9, 1024, %s200_s13, [#allocation6], %s1891_s10, %s1891_s10, %s1560_s11  }
  0x16   : > { %p40_p12 = scmp.ne.s32.totalorder %s1552_s20, %s1548_s19  ;;  %p31_p13 = scmp.eq.s32.totalorder %s30_s16, 0 }
  0x17   : > { %p41_p0 = scmp.eq.s32.totalorder %s1556_s21, 0  ;;  %p1319_p5 = scmp.lt.s32.totalorder %s1556_s21, 2 }
  0x18   : > { %p1668_p3 = por %p133_p2, %p40_p12  ;;  %s216_s26 = sand.u32 1, %s1552_s20  }
  0x19   : > { %s1674_s23 = scalar_select %p31_p13, %s1552_s20, %s33_s15  }
  0x1a   : > { %p42_p7 = por %p41_p0, %p40_p12  ;;  %s994_s27 = sshll.u32 %s216_s26, 7 }
  0x1b   : > { %s1139_s28 = sshll.u32 %s1556_s21, 7  ;;  %s220_s8 = scalar_lea.vmem [#allocation2], %s994_s27 }
  0x1c   : > { %s225_s7 = scalar_lea.hbm %s1885_s0, %s1139_s28  ;;  %s228_s9 = sshll.u32 %s220_s8, 4  ;;  %s229_s9 = int_to_ptr.vmem [resolvable:$true] %s228_s9 }
  0x1d   : > { %s226_s12 = sshll.u32 %s225_s7, 4  ;;  %p1681_p2 = pnand %p1319_p5, %p42_p7  ;;  %s227_s12 = int_to_ptr.hbm [resolvable:$true] %s226_s12 }
  0x1e   : > { %s217_s15 = scalar_lea.sflag [#allocation3], %s216_s26  ;;  %s1424_s16 = sshra.s32 %s227_s12, 4  ;;  %s1425_s16 = int_to_ptr.hbm [resolvable:$true] %s1424_s16 }
  0x1f   : > { %s1426_s10 = scalar_lea.hbm %s1425_s16, 128  ;;  %p1428_p10 = pneg %p1681_p2 }
  0x20   : > { %p1427_p9 = scmp.ne.s32.totalorder %s1425_s16, %s1426_s10  ;;  %s1431_s30 = scalar_lea.hbm %s1885_s0, 256 }
  0x21   : > { %p1432_p0 = scmp.lt.s32.totalorder %s1425_s16, %s1885_s0  ;;  %p1433_p5 = scmp.lt.s32.totalorder %s1431_s30, %s1426_s10 }
  0x22   : > { %p1429_p12 = pnand %p1428_p10, %p1427_p9 }
  0x23   : > { %p1434_p7 = por %p1433_p5, %p1432_p0 }
  0x24   : > { %p1430_p13 = pneg %p1429_p12 }
  0x26   : > { %p1435_p11 = pnand %p1434_p7, %p1430_p13 }
  0x28   : > { %1438 = shalt.err (!%p1435_p11)
}
  0x29   : > { %s1897_s26 = smov 64   ;;  %240 = sbr.rel (%p1639_p8) target bundleno = 353 (0x161), region = 36 }
  0x2a   : > { %1309 = dma.hbm_to_vmem [thread:$0]  (!%p1681_p2), %s227_s12, 2048, %s229_s9, %s217_s15, %s1897_s26, %s1897_s26, %s1560_s11  }
  0x2b   : > { %s1701_s8 = sand.u32 (!%p1639_p8), 1, %s1548_s19  }
  0x2c   : > { %s998_s10 = sshll.u32 (!%p1639_p8), %s1701_s8, 7  ;;  %s243_s16 = scalar_lea.sflag (!%p1639_p8), [#allocation3], %s1701_s8 }
  0x2d   : > { %s1707_s28 = scalar_lea.vmem (!%p1639_p8), [#allocation2], %s998_s10 }
  0x2e   : > { %1527 = dma.done.wait (%p1626_p4), %s243_s16, 2048  }
  0x2f   : > { %1529 = vsyncadd (%p1626_p4), %s243_s16, 4294965248 }
  0x30   : > { %1531 = dma.done.wait (%p47_p1), [#allocation6], 2048  }
  0x31   : > { %1533 = vsyncadd (%p47_p1), [#allocation6], 4294965248  ;;  %v1163_v0 = vld [vmem:[#allocation5 + $0x38] sm:$0xff]  ;;  %v1162_v2 = vld [vmem:[#allocation5 + $0x30] sm:$0xff]  ;;  %s1002_s24 = sshll.u32 %s1701_s8, 8  ;;  %s1748_s12 = scalar_lea.vmem [#allocation8], %s998_s10 }
  0x32   : > { %v1171_v1 = vld [vmem:[#allocation7 + $0x38] sm:$0xff]  ;;  %484 = vmatpush.bf16.msra.mxu0 %v1163_v0  ;;  %1269 = vmatpush.bf16.msra.mxu2 %v1163_v0  ;;  %v1170_v3 = vld [vmem:[#allocation7 + $0x30] sm:$0xff]  ;;  %v1161_v4 = vld [vmem:[#allocation5 + $0x28] sm:$0xff]  ;;  %s1740_s9 = scalar_lea.vmem [#allocation9], %s1002_s24  ;;  %s1172_s13 = sshll.u32 %s1617_s22, 7 }
  0x33   : > { %641 = vmatpush.bf16.msra.mxu1 %v1171_v1  ;;  %1277 = vmatpush.bf16.msra.mxu3 %v1171_v1  ;;  %v1169_v5 = vld [vmem:[#allocation7 + $0x28] sm:$0xff]  ;;  %v1160_v6 = vld [vmem:[#allocation5 + $0x20] sm:$0xff]  ;;  %v1159_v8 = vld [vmem:[#allocation5 + $0x18] sm:$0xff]  ;;  %s1173_s15 = sshll.u32 %s1617_s22, 8  ;;  %s843_s6 = scalar_lea.hbm %s1889_s4, %s1172_s13 }
  0x34   : > { %v1168_v7 = vld [vmem:[#allocation7 + $0x20] sm:$0xff]  ;;  %v1167_v9 = vld [vmem:[#allocation7 + $0x18] sm:$0xff]  ;;  %v1158_v10 = vld [vmem:[#allocation5 + $0x10] sm:$0xff]  ;;  %s844_s7 = sshll.u32 %s1748_s12, 4  ;;  %s860_s16 = scalar_lea.hbm %s1890_s5, %s1173_s15  ;;  %s1831_s7 = int_to_ptr.vmem [resolvable:$true] %s844_s7 }
  0x35   : > { %v1166_v11 = vld [vmem:[#allocation7 + $0x10] sm:$0xff]  ;;  %v1157_v12 = vld [vmem:[#allocation5 + $0x8] sm:$0xff]  ;;  %v1156_v14 = vld [vmem:[#allocation5] sm:$0xff]  ;;  %s846_s22 = sshll.u32 %s843_s6, 4  ;;  %s863_s24 = sshll.u32 %s860_s16, 4  ;;  %s847_s22 = int_to_ptr.hbm [resolvable:$true] %s846_s22  ;;  %s1837_s24 = int_to_ptr.hbm [resolvable:$true] %s863_s24 }
  0x36   : > { %485 = vmatpush.bf16.msra.mxu0 %v1162_v2  ;;  %1270 = vmatpush.bf16.msra.mxu2 %v1162_v2  ;;  %v1165_v13 = vld [vmem:[#allocation7 + $0x8] sm:$0xff]  ;;  %v1164_v15 = vld [vmem:[#allocation7] sm:$0xff]  ;;  %v1142_v20 = vld [vmem:[%s1707_s28 + $0x10] sm:$0xff]  ;;  %s827_s29 = scalar_lea.sflag [#allocation4], %s1701_s8  ;;  %s1468_s11 = sshra.s32 %s847_s22, 4  ;;  %s1469_s11 = int_to_ptr.hbm [resolvable:$true] %s1468_s11 }
  0x37   : > { %642 = vmatpush.bf16.msra.mxu1 %v1170_v3  ;;  %1278 = vmatpush.bf16.msra.mxu3 %v1170_v3  ;;  %v1140_v16 = vld [vmem:[%s1707_s28] sm:$0xff]  ;;  %v1141_v18 = vld [vmem:[%s1707_s28 + $0x8] sm:$0xff]  ;;  %v1150_v21 = vld [vmem:[%s1707_s28 + $0x50] sm:$0xff]  ;;  %s1470_s13 = scalar_lea.hbm %s1469_s11, 128  ;;  %s1474_s30 = scalar_lea.hbm %s1889_s4, 256 }
  0x38   : > { %v1148_v17 = vld [vmem:[%s1707_s28 + $0x40] sm:$0xff]  ;;  %v1149_v19 = vld [vmem:[%s1707_s28 + $0x48] sm:$0xff]  ;;  %v1143_v22 = vld [vmem:[%s1707_s28 + $0x18] sm:$0xff]  ;;  %p1471_p1 = scmp.ne.s32.totalorder %s1469_s11, %s1470_s13  ;;  %p1475_p11 = scmp.lt.s32.totalorder %s1469_s11, %s1889_s4 }
  0x39   : > { %v1151_v23 = vld [vmem:[%s1707_s28 + $0x58] sm:$0xff]  ;;  %v1144_v24 = vld [vmem:[%s1707_s28 + $0x20] sm:$0xff]  ;;  %v1145_v26 = vld [vmem:[%s1707_s28 + $0x28] sm:$0xff]  ;;  %p1476_p2 = scmp.lt.s32.totalorder %s1474_s30, %s1470_s13 }
  0x3a   : > { %486 = vmatpush.bf16.msra.mxu0 %v1161_v4  ;;  %1271 = vmatpush.bf16.msra.mxu2 %v1161_v4  ;;  %v1152_v25 = vld [vmem:[%s1707_s28 + $0x60] sm:$0xff]  ;;  %v1153_v27 = vld [vmem:[%s1707_s28 + $0x68] sm:$0xff]  ;;  %v1146_v28 = vld [vmem:[%s1707_s28 + $0x30] sm:$0xff]  ;;  %p1472_p4 = pnand %p1471_p1, %p1668_p3 }
  0x3b   : > { %643 = vmatpush.bf16.msra.mxu1 %v1169_v5  ;;  %1279 = vmatpush.bf16.msra.mxu3 %v1169_v5  ;;  %v1154_v29 = vld [vmem:[%s1707_s28 + $0x70] sm:$0xff]  ;;  %v1147_v30 = vld [vmem:[%s1707_s28 + $0x38] sm:$0xff]  ;;  %v1737_v32 = vld [vmem:[%s1888_s3] ss:$0 sm:$0xff]  ;;  %p1477_p9 = por %p1476_p2, %p1475_p11 }
  0x3c   : > { %v1155_v31 = vld [vmem:[%s1707_s28 + $0x78] sm:$0xff]  ;;  %s861_s28 = sshll.u32 %s1740_s9, 4  ;;  %p1473_p8 = pneg %p1472_p4  ;;  %s1835_s28 = int_to_ptr.vmem [resolvable:$true] %s861_s28 }
  0x3e   : > { %487 = vmatpush.bf16.msra.mxu0 %v1160_v6  ;;  %1272 = vmatpush.bf16.msra.mxu2 %v1160_v6  ;;  %p1478_p10 = pnand %p1477_p9, %p1473_p8 }
  0x3f   : > { %644 = vmatpush.bf16.msra.mxu1 %v1168_v7  ;;  %1280 = vmatpush.bf16.msra.mxu3 %v1168_v7 }
  0x42   : > { %488 = vmatpush.bf16.msra.mxu0 %v1159_v8  ;;  %1273 = vmatpush.bf16.msra.mxu2 %v1159_v8 }
  0x43   : > { %645 = vmatpush.bf16.msra.mxu1 %v1167_v9  ;;  %1281 = vmatpush.bf16.msra.mxu3 %v1167_v9 }
  0x46   : > { %489 = vmatpush.bf16.msra.mxu0 %v1158_v10  ;;  %1274 = vmatpush.bf16.msra.mxu2 %v1158_v10 }
  0x47   : > { %646 = vmatpush.bf16.msra.mxu1 %v1166_v11  ;;  %1282 = vmatpush.bf16.msra.mxu3 %v1166_v11 }
  0x4a   : > { %490 = vmatpush.bf16.msra.mxu0 %v1157_v12  ;;  %1275 = vmatpush.bf16.msra.mxu2 %v1157_v12 }
  0x4b   : > { %647 = vmatpush.bf16.msra.mxu1 %v1165_v13  ;;  %1283 = vmatpush.bf16.msra.mxu3 %v1165_v13 }
  0x4e   : > { %491 = vmatpush.bf16.msra.mxu0 %v1156_v14  ;;  %1276 = vmatpush.bf16.msra.mxu2 %v1156_v14 }
  0x4f   : > { %648 = vmatpush.bf16.msra.mxu1 %v1164_v15  ;;  %1284 = vmatpush.bf16.msra.mxu3 %v1164_v15 }
  0x51   : > { %492 = vmatmul.bf16.vlgmr.msra.gmra.mxu0 %v1140_v16  ;;  %532 = vmatmul.bf16.vlgmr.msra.gmra.mxu2 %v1148_v17 }
  0x52   : > { %649 = vmatmul.bf16.vlgmr.msra.gmra.mxu1 %v1140_v16  ;;  %689 = vmatmul.bf16.vlgmr.msra.gmra.mxu3 %v1148_v17 }
  0x61   : > { %497 = vmatmul.bf16.gmra.mxu0 %v1141_v18  ;;  %537 = vmatmul.bf16.gmra.mxu2 %v1149_v19 }
  0x62   : > { %654 = vmatmul.bf16.gmra.mxu1 %v1141_v18  ;;  %694 = vmatmul.bf16.gmra.mxu3 %v1149_v19 }
  0x71   : > { %502 = vmatmul.bf16.gmra.mxu0 %v1142_v20  ;;  %542 = vmatmul.bf16.gmra.mxu2 %v1150_v21 }
  0x72   : > { %659 = vmatmul.bf16.gmra.mxu1 %v1142_v20  ;;  %699 = vmatmul.bf16.gmra.mxu3 %v1150_v21 }
  0x81   : > { %507 = vmatmul.bf16.gmra.mxu0 %v1143_v22  ;;  %547 = vmatmul.bf16.gmra.mxu2 %v1151_v23 }
  0x82   : > { %664 = vmatmul.bf16.gmra.mxu1 %v1143_v22  ;;  %704 = vmatmul.bf16.gmra.mxu3 %v1151_v23 }
  0x91   : > { %512 = vmatmul.bf16.gmra.mxu0 %v1144_v24  ;;  %552 = vmatmul.bf16.gmra.mxu2 %v1152_v25 }
  0x92   : > { %669 = vmatmul.bf16.gmra.mxu1 %v1144_v24  ;;  %709 = vmatmul.bf16.gmra.mxu3 %v1152_v25 }
  0xa1   : > { %517 = vmatmul.bf16.gmra.mxu0 %v1145_v26  ;;  %557 = vmatmul.bf16.gmra.mxu2 %v1153_v27 }
  0xa2   : > { %674 = vmatmul.bf16.gmra.mxu1 %v1145_v26  ;;  %714 = vmatmul.bf16.gmra.mxu3 %v1153_v27 }
  0xb1   : > { %522 = vmatmul.bf16.gmra.mxu0 %v1146_v28  ;;  %562 = vmatmul.bf16.gmra.mxu2 %v1154_v29 }
  0xb2   : > { %679 = vmatmul.bf16.gmra.mxu1 %v1146_v28  ;;  %719 = vmatmul.bf16.gmra.mxu3 %v1154_v29 }
  0xc1   : > { %527 = vmatmul.bf16.gmra.mxu0 %v1147_v30  ;;  %567 = vmatmul.bf16.gmra.mxu2 %v1155_v31 }
  0xc2   : > { %684 = vmatmul.bf16.gmra.mxu1 %v1147_v30  ;;  %724 = vmatmul.bf16.gmra.mxu3 %v1155_v31 }
  0xce   : > { %v493_v33 = vpop.f32.mrf.mxu0 }
  0xcf   : > { %v650_v34 = vpop.f32.mrf.mxu1 }
  0xd0   : > { %v651_v35 = vadd.f32 %v1737_v32, %v650_v34 }
  0xd2   : > { %794 = vst [vmem:[%s1740_s9] sm:$0xff] %v651_v35 }
  0xd4   : > { %v533_v36 = vpop.f32.mrf.mxu2 }
  0xd5   : > { %v690_v37 = vpop.f32.mrf.mxu3 }
  0xd6   : > { %v691_v38 = vadd.f32 %v1737_v32, %v690_v37  ;;  %v495_v39 = vpop.f32.mrf.mxu0 }
  0xd7   : > { %v1177_v40 = vpack.c.bf16 %v495_v39, %v493_v33  ;;  %v652_v41 = vpop.f32.mrf.mxu1 }
  0xd8   : > { %810 = vst [vmem:[%s1740_s9 + $0x80] sm:$0xff] %v691_v38  ;;  %v653_v42 = vadd.f32 %v1737_v32, %v652_v41 }
  0xd9   : > { %1178 = vst [vmem:[%s1748_s12] sm:$0xff] %v1177_v40  }
  0xda   : > { %795 = vst [vmem:[%s1740_s9 + $0x8] sm:$0xff] %v653_v42 }
  0xdc   : > { %v535_v43 = vpop.f32.mrf.mxu2 }
  0xdd   : > { %v1217_v44 = vpack.c.bf16 %v535_v43, %v533_v36  ;;  %v692_v45 = vpop.f32.mrf.mxu3 }
  0xde   : > { %v693_v46 = vadd.f32 %v1737_v32, %v692_v45  ;;  %v498_v47 = vpop.f32.mrf.mxu0 }
  0xdf   : > { %1261 = vst [vmem:[%s1748_s12 + $0x40] sm:$0xff] %v1217_v44   ;;  %v655_v48 = vpop.f32.mrf.mxu1 }
  0xe0   : > { %811 = vst [vmem:[%s1740_s9 + $0x88] sm:$0xff] %v693_v46  ;;  %v656_v49 = vadd.f32 %v1737_v32, %v655_v48 }
  0xe2   : > { %796 = vst [vmem:[%s1740_s9 + $0x10] sm:$0xff] %v656_v49 }
  0xe4   : > { %v538_v50 = vpop.f32.mrf.mxu2 }
  0xe5   : > { %v695_v51 = vpop.f32.mrf.mxu3 }
  0xe6   : > { %v696_v52 = vadd.f32 %v1737_v32, %v695_v51  ;;  %v500_v53 = vpop.f32.mrf.mxu0 }
  0xe7   : > { %v1182_v54 = vpack.c.bf16 %v500_v53, %v498_v47  ;;  %v657_v55 = vpop.f32.mrf.mxu1 }
  0xe8   : > { %812 = vst [vmem:[%s1740_s9 + $0x90] sm:$0xff] %v696_v52  ;;  %v658_v56 = vadd.f32 %v1737_v32, %v657_v55 }
  0xe9   : > { %1254 = vst [vmem:[%s1748_s12 + $0x8] sm:$0xff] %v1182_v54  }
  0xea   : > { %797 = vst [vmem:[%s1740_s9 + $0x18] sm:$0xff] %v658_v56 }
  0xec   : > { %v540_v57 = vpop.f32.mrf.mxu2 }
  0xed   : > { %v1222_v58 = vpack.c.bf16 %v540_v57, %v538_v50  ;;  %v697_v59 = vpop.f32.mrf.mxu3 }
  0xee   : > { %v698_v60 = vadd.f32 %v1737_v32, %v697_v59  ;;  %v503_v61 = vpop.f32.mrf.mxu0 }
  0xef   : > { %1262 = vst [vmem:[%s1748_s12 + $0x48] sm:$0xff] %v1222_v58   ;;  %v660_v62 = vpop.f32.mrf.mxu1 }
  0xf0   : > { %813 = vst [vmem:[%s1740_s9 + $0x98] sm:$0xff] %v698_v60  ;;  %v661_v63 = vadd.f32 %v1737_v32, %v660_v62 }
  0xf2   : > { %798 = vst [vmem:[%s1740_s9 + $0x20] sm:$0xff] %v661_v63 }
  0xf4   : > { %v543_v0 = vpop.f32.mrf.mxu2 }
  0xf5   : > { %v700_v1 = vpop.f32.mrf.mxu3 }
  0xf6   : > { %v701_v2 = vadd.f32 %v1737_v32, %v700_v1  ;;  %v505_v3 = vpop.f32.mrf.mxu0 }
  0xf7   : > { %v1187_v4 = vpack.c.bf16 %v505_v3, %v503_v61  ;;  %v662_v5 = vpop.f32.mrf.mxu1 }
  0xf8   : > { %814 = vst [vmem:[%s1740_s9 + $0xa0] sm:$0xff] %v701_v2  ;;  %v663_v6 = vadd.f32 %v1737_v32, %v662_v5 }
  0xf9   : > { %1255 = vst [vmem:[%s1748_s12 + $0x10] sm:$0xff] %v1187_v4  }
  0xfa   : > { %799 = vst [vmem:[%s1740_s9 + $0x28] sm:$0xff] %v663_v6 }
  0xfc   : > { %v545_v7 = vpop.f32.mrf.mxu2 }
  0xfd   : > { %v1227_v8 = vpack.c.bf16 %v545_v7, %v543_v0  ;;  %v702_v9 = vpop.f32.mrf.mxu3 }
  0xfe   : > { %v703_v10 = vadd.f32 %v1737_v32, %v702_v9  ;;  %v508_v11 = vpop.f32.mrf.mxu0 }
  0xff   : > { %1263 = vst [vmem:[%s1748_s12 + $0x50] sm:$0xff] %v1227_v8   ;;  %v665_v12 = vpop.f32.mrf.mxu1 }
 0x100   : > { %815 = vst [vmem:[%s1740_s9 + $0xa8] sm:$0xff] %v703_v10  ;;  %v666_v13 = vadd.f32 %v1737_v32, %v665_v12 }
 0x102   : > { %800 = vst [vmem:[%s1740_s9 + $0x30] sm:$0xff] %v666_v13 }
 0x104   : > { %v548_v14 = vpop.f32.mrf.mxu2 }
 0x105   : > { %v705_v15 = vpop.f32.mrf.mxu3 }
 0x106   : > { %v706_v16 = vadd.f32 %v1737_v32, %v705_v15  ;;  %v510_v17 = vpop.f32.mrf.mxu0 }
 0x107   : > { %v1192_v18 = vpack.c.bf16 %v510_v17, %v508_v11  ;;  %v667_v19 = vpop.f32.mrf.mxu1 }
 0x108   : > { %816 = vst [vmem:[%s1740_s9 + $0xb0] sm:$0xff] %v706_v16  ;;  %v668_v20 = vadd.f32 %v1737_v32, %v667_v19 }
 0x109   : > { %1256 = vst [vmem:[%s1748_s12 + $0x18] sm:$0xff] %v1192_v18  }
 0x10a   : > { %801 = vst [vmem:[%s1740_s9 + $0x38] sm:$0xff] %v668_v20 }
 0x10c   : > { %v550_v21 = vpop.f32.mrf.mxu2 }
 0x10d   : > { %v1232_v22 = vpack.c.bf16 %v550_v21, %v548_v14  ;;  %v707_v23 = vpop.f32.mrf.mxu3 }
 0x10e   : > { %v708_v24 = vadd.f32 %v1737_v32, %v707_v23  ;;  %v513_v25 = vpop.f32.mrf.mxu0 }
 0x10f   : > { %1264 = vst [vmem:[%s1748_s12 + $0x58] sm:$0xff] %v1232_v22   ;;  %v670_v26 = vpop.f32.mrf.mxu1 }
 0x110   : > { %817 = vst [vmem:[%s1740_s9 + $0xb8] sm:$0xff] %v708_v24  ;;  %v671_v27 = vadd.f32 %v1737_v32, %v670_v26 }
 0x112   : > { %802 = vst [vmem:[%s1740_s9 + $0x40] sm:$0xff] %v671_v27 }
 0x114   : > { %v553_v28 = vpop.f32.mrf.mxu2 }
 0x115   : > { %v710_v29 = vpop.f32.mrf.mxu3 }
 0x116   : > { %v711_v30 = vadd.f32 %v1737_v32, %v710_v29  ;;  %v515_v31 = vpop.f32.mrf.mxu0 }
 0x117   : > { %v1197_v33 = vpack.c.bf16 %v515_v31, %v513_v25  ;;  %v672_v34 = vpop.f32.mrf.mxu1 }
 0x118   : > { %818 = vst [vmem:[%s1740_s9 + $0xc0] sm:$0xff] %v711_v30  ;;  %v673_v35 = vadd.f32 %v1737_v32, %v672_v34 }
 0x119   : > { %1257 = vst [vmem:[%s1748_s12 + $0x20] sm:$0xff] %v1197_v33  }
 0x11a   : > { %803 = vst [vmem:[%s1740_s9 + $0x48] sm:$0xff] %v673_v35 }
 0x11c   : > { %v555_v36 = vpop.f32.mrf.mxu2 }
 0x11d   : > { %v1237_v37 = vpack.c.bf16 %v555_v36, %v553_v28  ;;  %v712_v38 = vpop.f32.mrf.mxu3 }
 0x11e   : > { %v713_v39 = vadd.f32 %v1737_v32, %v712_v38  ;;  %v518_v40 = vpop.f32.mrf.mxu0 }
 0x11f   : > { %1265 = vst [vmem:[%s1748_s12 + $0x60] sm:$0xff] %v1237_v37   ;;  %v675_v41 = vpop.f32.mrf.mxu1 }
 0x120   : > { %819 = vst [vmem:[%s1740_s9 + $0xc8] sm:$0xff] %v713_v39  ;;  %v676_v42 = vadd.f32 %v1737_v32, %v675_v41 }
 0x122   : > { %804 = vst [vmem:[%s1740_s9 + $0x50] sm:$0xff] %v676_v42 }
 0x124   : > { %v558_v43 = vpop.f32.mrf.mxu2 }
 0x125   : > { %v715_v44 = vpop.f32.mrf.mxu3 }
 0x126   : > { %v716_v45 = vadd.f32 %v1737_v32, %v715_v44  ;;  %v520_v46 = vpop.f32.mrf.mxu0 }
 0x127   : > { %v1202_v47 = vpack.c.bf16 %v520_v46, %v518_v40  ;;  %v677_v48 = vpop.f32.mrf.mxu1 }
 0x128   : > { %820 = vst [vmem:[%s1740_s9 + $0xd0] sm:$0xff] %v716_v45  ;;  %v678_v49 = vadd.f32 %v1737_v32, %v677_v48 }
 0x129   : > { %1258 = vst [vmem:[%s1748_s12 + $0x28] sm:$0xff] %v1202_v47  }
 0x12a   : > { %805 = vst [vmem:[%s1740_s9 + $0x58] sm:$0xff] %v678_v49 }
 0x12c   : > { %v560_v50 = vpop.f32.mrf.mxu2 }
 0x12d   : > { %v1242_v51 = vpack.c.bf16 %v560_v50, %v558_v43  ;;  %v717_v52 = vpop.f32.mrf.mxu3 }
 0x12e   : > { %v718_v53 = vadd.f32 %v1737_v32, %v717_v52  ;;  %v523_v54 = vpop.f32.mrf.mxu0 }
 0x12f   : > { %1266 = vst [vmem:[%s1748_s12 + $0x68] sm:$0xff] %v1242_v51   ;;  %v680_v55 = vpop.f32.mrf.mxu1 }
 0x130   : > { %821 = vst [vmem:[%s1740_s9 + $0xd8] sm:$0xff] %v718_v53  ;;  %v681_v56 = vadd.f32 %v1737_v32, %v680_v55 }
 0x132   : > { %806 = vst [vmem:[%s1740_s9 + $0x60] sm:$0xff] %v681_v56 }
 0x134   : > { %v563_v57 = vpop.f32.mrf.mxu2 }
 0x135   : > { %v720_v58 = vpop.f32.mrf.mxu3 }
 0x136   : > { %v721_v59 = vadd.f32 %v1737_v32, %v720_v58  ;;  %v525_v60 = vpop.f32.mrf.mxu0 }
 0x137   : > { %v1207_v61 = vpack.c.bf16 %v525_v60, %v523_v54  ;;  %v682_v62 = vpop.f32.mrf.mxu1 }
 0x138   : > { %822 = vst [vmem:[%s1740_s9 + $0xe0] sm:$0xff] %v721_v59  ;;  %v683_v63 = vadd.f32 %v1737_v32, %v682_v62 }
 0x139   : > { %1259 = vst [vmem:[%s1748_s12 + $0x30] sm:$0xff] %v1207_v61  }
 0x13a   : > { %807 = vst [vmem:[%s1740_s9 + $0x68] sm:$0xff] %v683_v63 }
 0x13c   : > { %v565_v0 = vpop.f32.mrf.mxu2 }
 0x13d   : > { %v1247_v1 = vpack.c.bf16 %v565_v0, %v563_v57  ;;  %v722_v2 = vpop.f32.mrf.mxu3 }
 0x13e   : > { %v723_v3 = vadd.f32 %v1737_v32, %v722_v2  ;;  %v528_v4 = vpop.f32.mrf.mxu0 }
 0x13f   : > { %1267 = vst [vmem:[%s1748_s12 + $0x70] sm:$0xff] %v1247_v1   ;;  %v685_v5 = vpop.f32.mrf.mxu1 }
 0x140   : > { %823 = vst [vmem:[%s1740_s9 + $0xe8] sm:$0xff] %v723_v3  ;;  %v686_v6 = vadd.f32 %v1737_v32, %v685_v5 }
 0x142   : > { %808 = vst [vmem:[%s1740_s9 + $0x70] sm:$0xff] %v686_v6 }
 0x144   : > { %v568_v7 = vpop.f32.mrf.mxu2 }
 0x145   : > { %v725_v8 = vpop.f32.mrf.mxu3 }
 0x146   : > { %v726_v9 = vadd.f32 %v1737_v32, %v725_v8  ;;  %v530_v10 = vpop.f32.mrf.mxu0 }
 0x147   : > { %v1212_v11 = vpack.c.bf16 %v530_v10, %v528_v4  ;;  %v687_v12 = vpop.f32.mrf.mxu1 }
 0x148   : > { %824 = vst [vmem:[%s1740_s9 + $0xf0] sm:$0xff] %v726_v9  ;;  %v688_v13 = vadd.f32 %v1737_v32, %v687_v12 }
 0x149   : > { %1260 = vst [vmem:[%s1748_s12 + $0x38] sm:$0xff] %v1212_v11  }
 0x14a   : > { %809 = vst [vmem:[%s1740_s9 + $0x78] sm:$0xff] %v688_v13 }
 0x14c   : > { %v570_v14 = vpop.f32.mrf.mxu2 }
 0x14d   : > { %v1252_v15 = vpack.c.bf16 %v570_v14, %v568_v7  ;;  %v727_v16 = vpop.f32.mrf.mxu3 }
 0x14e   : > { %v728_v17 = vadd.f32 %v1737_v32, %v727_v16 }
 0x14f   : > { %1268 = vst [vmem:[%s1748_s12 + $0x78] sm:$0xff] %v1252_v15  }
 0x150   : > { %825 = vst [vmem:[%s1740_s9 + $0xf8] sm:$0xff] %v728_v17 }
 0x151   : > { %1481 = shalt.err (!%p1478_p10)
}
 0x152   : > { %s1562_s9 = smov 64   ;;  %s1563_s12 = smov 4  }
 0x153   : > { %1295 = dma.vmem_to_hbm [thread:$0]  (%p1668_p3), %s1831_s7, 2048, %s847_s22, %s827_s29, %s1562_s9, %s1562_s9, %s1563_s12  }
 0x154   : > { %s832_s10 = scalar_lea.sflag [#allocation10], %s1701_s8  ;;  %s1496_s16 = sshra.s32 %s1837_s24, 4  ;;  %s1497_s16 = int_to_ptr.hbm [resolvable:$true] %s1496_s16 }
 0x155   : > { %s1498_s15 = scalar_lea.hbm %s1497_s16, 256  ;;  %s1502_s27 = scalar_lea.hbm %s1890_s5, 512 }
 0x156   : > { %p1499_p12 = scmp.ne.s32.totalorder %s1497_s16, %s1498_s15  ;;  %p1503_p5 = scmp.lt.s32.totalorder %s1497_s16, %s1890_s5 }
 0x157   : > { %p1504_p7 = scmp.lt.s32.totalorder %s1502_s27, %s1498_s15 }
 0x158   : > { %p1500_p13 = pnand %p1499_p12, %p1668_p3 }
 0x159   : > { %p1505_p1 = por %p1504_p7, %p1503_p5 }
 0x15a   : > { %p1501_p0 = pneg %p1500_p13 }
 0x15c   : > { %p1506_p4 = pnand %p1505_p1, %p1501_p0 }
 0x15e   : > { %1509 = shalt.err (!%p1506_p4)
}
 0x15f   : > { %s1564_s8 = smov 128   ;;  %s1565_s7 = smov 8  }
 0x160   : > { %1296 = dma.vmem_to_hbm [thread:$0]  (%p1668_p3), %s1835_s28, 4096, %s1837_s24, %s832_s10, %s1564_s8, %s1564_s8, %s1565_s7  }
 0x161 PF: > { %s878_s22 = sand.u32 1, %s1544_s18   ;;  %p1898_p8 = scmp.ge.s32.totalorder %s1556_s21, 2 }
 0x162   : > { %s879_s29 = scalar_lea.sflag [#allocation4], %s878_s22 }
 0x163   : > { %p1311_p11 = pnand %p1898_p8, %p1631_p6 }
 0x165   : > { %p1312_p2 = pneg %p1311_p11 }
 0x167   : > { %1535 = dma.done.wait (%p1312_p2), %s879_s29, 2048  }
 0x168   : > { %1537 = vsyncadd (%p1312_p2), %s879_s29, 4294965248  ;;  %s889_s26 = scalar_lea.sflag [#allocation10], %s878_s22 }
 0x169   : > { %1539 = dma.done.wait (%p1312_p2), %s889_s26, 4096  }
 0x16a   : > { %1541 = vsyncadd (%p1312_p2), %s889_s26, 4294963200  ;;  %p23_p3 = scmp.ge.s32.totalorder %s1658_s14, 4   ;;  %s1899_s18 = smov %s1548_s19 }
 0x16b   : > { %s1900_s19 = smov %s1552_s20  ;;  %s1901_s20 = smov %s1674_s23 }
 0x16c   : > { %s1902_s21 = smov %s1658_s14  ;;  %25 = sbr.rel (!%p23_p3) target bundleno = 8 (0x8), region = 106 }
 0x171   :  { %895 = vsyncpa [#allocation3], 1 }
 0x172   :  { %897 = vsyncpa [#allocation3 + $0x1], 1 }
 0x173   :  { %898 = vsyncpa [#allocation6], 1 }
 0x174   :  { %899 = vsyncpa [#allocation4], 1 }
 0x175   :  { %901 = vsyncpa [#allocation4 + $0x1], 1 }
 0x176   :  { %902 = vsyncpa [#allocation10], 1 }
 0x177   :  { %904 = vsyncpa [#allocation10 + $0x1], 1 }

</bundles_post_ra>
